<compile_context>
chip_gen: v5e
topology: v5e:2x2
jax: 0.10.0
libtpu: 0.0.40
codegen_flags: <defaults>
</compile_context>

<pallas_src>
import functools

import jax
import jax.numpy as jnp
from jax import lax
from jax.experimental import pallas as pl
from jax.experimental.pallas import tpu as pltpu


def _focal_loss_kernel(*refs, gamma, n_rows, has_alpha):
    # refs (has_alpha=True):  x_ref (T,C), tgt_ref (T,1), at_ref (T,1), out_ref (1,8,128)
    # refs (has_alpha=False): x_ref (T,C), tgt_ref (T,1),               out_ref (1,8,128)
    if has_alpha:
        x_ref, tgt_ref, at_ref, out_ref = refs
    else:
        x_ref, tgt_ref, out_ref = refs
        at_ref = None

    i = pl.program_id(0)

    x = x_ref[...].astype(jnp.float32)            # (T, C) f32 (cast in VMEM)
    tgt = tgt_ref[...]                            # (T, 1) int32

    t, c = x.shape
    class_ids = lax.broadcasted_iota(jnp.int32, (t, c), 1)
    onehot = class_ids == tgt                     # (T, C) bool

    # cross entropy (reduction='none'): logsumexp(x) - x[target]
    m = jnp.max(x, axis=1, keepdims=True)                             # (T, 1)
    lse = m + jnp.log(jnp.sum(jnp.exp(x - m), axis=1, keepdims=True))
    x_t = jnp.sum(jnp.where(onehot, x, 0.0), axis=1, keepdims=True)
    ce = lse - x_t                                                    # (T, 1)

    # pt = exp(-ce)
    pt = jnp.exp(-ce)                                                 # (T, 1)

    # alpha weighting: at = alpha[target] was gathered in the wrapper.
    if has_alpha:
        ce = at_ref[...].astype(jnp.float32) * ce

    # (1 - pt) ** gamma.  Clamp at 0 (ce can round slightly negative -> pt > 1);
    # integer gamma uses VPU repeated-multiply instead of EUP pow.
    q = jnp.maximum(1.0 - pt, 0.0)
    g = float(gamma)
    if g.is_integer() and 0.0 <= g <= 16.0:
        e = int(g)
        if e == 0:
            modulator = jnp.ones_like(q)
        else:
            acc = None
            base = q
            while e > 0:                      # unrolled at trace time
                if e & 1:
                    acc = base if acc is None else acc * base
                e >>= 1
                if e:
                    base = base * base
            modulator = acc
    else:
        modulator = jnp.power(q, g)

    focal = modulator * ce                                            # (T, 1)

    # Mask rows past the true batch size (ragged last tile): garbage rows may
    # be inf/nan, jnp.where (select) discards them.
    row = i * t + lax.broadcasted_iota(jnp.int32, (t, 1), 0)
    focal = jnp.where(row < n_rows, focal, 0.0)

    s = jnp.sum(focal)
    # Lane-dense partial-sum write: broadcast the scalar into the (8,128) block.
    out_ref[...] = jnp.broadcast_to(s, out_ref.shape).astype(jnp.float32)


def _vmem_capacity_bytes():
    """Physical VMEM per TensorCore (128 MiB v5e/v6e, 64 MiB v7x)."""
    try:
        return int(pltpu.get_tpu_info().vmem_capacity_bytes)
    except Exception:
        return 64 << 20  # conservative (v7x-sized) fallback


def _pick_tile_n(n, c, itemsize, vmem_limit_bytes):
    """Rows per tile: sublane-multiple, full-C lane-dense, VMEM-budget driven."""
    sublane = max(8, 32 // max(1, itemsize))     # 8 f32, 16 bf16, 32 int8
    n_pad8 = -(-n // 8) * 8                       # minimal legal padded extent

    # Working set per row: double-buffered input tile + ~3 f32 (T,C) temps
    # (f32 cast of x, exp(x-m), one-hot select).  Use ~half the VMEM limit.
    per_row = c * (2 * itemsize + 3 * 4)
    budget = vmem_limit_bytes // 2
    rows = (budget // max(1, per_row)) // sublane * sublane
    rows = max(sublane, min(rows, 8192))

    # Never allocate a block bigger than the (8-padded) batch.
    rows = min(rows, n_pad8)

    # v7x megacore: keep >= 4 grid steps when the batch allows it, so the
    # "parallel" grid axis shards across both TensorCores with some balance.
    min_tiles = 4
    if n_pad8 >= min_tiles * sublane:
        cap = max(sublane, (n_pad8 // min_tiles) // sublane * sublane)
        rows = min(rows, cap)

    return int(max(8, rows))


def focal_loss(logits, target, gamma=2.0, alpha=None, tile_n=None):
    """Pallas TPU focal loss. logits: (N, C) float, target: (N,) int."""
    n, c = logits.shape
    itemsize = jnp.dtype(logits.dtype).itemsize

    vmem_cap = _vmem_capacity_bytes()
    vmem_limit = int(min(vmem_cap * 3 // 4, 96 << 20))   # ~48 MiB v7x, 96 MiB v5e/v6e

    if tile_n is None:
        tile_n = _pick_tile_n(n, c, itemsize, vmem_limit)
    tile_n = int(tile_n)
    n_tiles = -(-n // tile_n)

    tgt2d = target.astype(jnp.int32).reshape(n, 1)

    has_alpha = alpha is not None
    inputs = [logits, tgt2d]
    in_specs = [
        pl.BlockSpec((tile_n, c), lambda i: (i, 0)),   # logits tile
        pl.BlockSpec((tile_n, 1), lambda i: (i, 0)),   # targets tile
    ]
    if has_alpha:
        # Tiny (N,) gather done by XLA in the wrapper; streamed per-tile.
        alpha_arr = jnp.asarray(alpha, dtype=jnp.float32).reshape(c)
        at2d = alpha_arr[target.astype(jnp.int32)].reshape(n, 1)
        inputs.append(at2d)
        in_specs.append(pl.BlockSpec((tile_n, 1), lambda i: (i, 0)))

    kernel = functools.partial(
        _focal_loss_kernel, gamma=float(gamma), n_rows=int(n), has_alpha=has_alpha
    )

    cost = pl.CostEstimate(
        flops=10 * n * c,
        transcendentals=n * c + 2 * n,
        bytes_accessed=(n * c * itemsize + n * 4 + (n * 4 if has_alpha else 0)
                        + n_tiles * 8 * 128 * 4),
    )

    partials = pl.pallas_call(
        kernel,
        out_shape=jax.ShapeDtypeStruct((n_tiles, 8, 128), jnp.float32),
        grid=(n_tiles,),
        in_specs=in_specs,
        out_specs=pl.BlockSpec((1, 8, 128), lambda i: (i, 0, 0)),
        compiler_params=pltpu.CompilerParams(
            dimension_semantics=("parallel",),
            vmem_limit_bytes=vmem_limit,
        ),
        cost_estimate=cost,
    )(*inputs)

    # Tiny final reduction + mean in the wrapper (each block holds its tile's
    # partial sum broadcast; take one lane per tile).
    return jnp.sum(partials[:, 0, 0]) / jnp.float32(n)


def _focal_loss_ref(logits, target, gamma=2.0, alpha=None):
    # pure-JAX reference (mirrors the PyTorch module)
    logits = logits.astype(jnp.float32)
    lse = jax.nn.logsumexp(logits, axis=1)
    x_t = jnp.take_along_axis(logits, target[:, None], axis=1)[:, 0]
    ce = lse - x_t
    pt = jnp.exp(-ce)
    if alpha is not None:
        at = jnp.asarray(alpha, jnp.float32)[target]
        ce = at * ce
    return jnp.mean((1.0 - pt) ** gamma * ce)


if __name__ == "__main__":
    key = jax.random.PRNGKey(0)
    k1, k2, k3, k4 = jax.random.split(key, 4)

    # Small shapes consistent with the module's forward (N, C) logits.
    N, C = 8, 16
    logits = jax.random.normal(k1, (N, C), dtype=jnp.float32)
    target = jax.random.randint(k2, (N,), 0, C, dtype=jnp.int32)
    alpha = jnp.linspace(0.25, 1.0, C, dtype=jnp.float32)

    out = jax.block_until_ready(focal_loss(logits, target, gamma=2.0, alpha=alpha))
    ref = _focal_loss_ref(logits, target, gamma=2.0, alpha=alpha)
    assert jnp.allclose(out, ref, rtol=1e-5, atol=1e-5), (out, ref)

    # alpha=None path (module default) — skips the alpha input entirely.
    out2 = jax.block_until_ready(focal_loss(logits, target, gamma=2.0, alpha=None))
    ref2 = _focal_loss_ref(logits, target, gamma=2.0, alpha=None)
    assert jnp.allclose(out2, ref2, rtol=1e-5, atol=1e-5), (out2, ref2)

    # Multi-tile + ragged-last-tile path (N not a multiple of the tile).
    N2 = 37
    logits2 = jax.random.normal(k3, (N2, C), dtype=jnp.float32)
    target2 = jax.random.randint(k4, (N2,), 0, C, dtype=jnp.int32)
    out3 = jax.block_until_ready(
        focal_loss(logits2, target2, gamma=2.0, alpha=alpha, tile_n=8)
    )
    ref3 = _focal_loss_ref(logits2, target2, gamma=2.0, alpha=alpha)
    assert jnp.allclose(out3, ref3, rtol=1e-5, atol=1e-5), (out3, ref3)

    # Same ragged case with the automatic (budget-driven + megacore-capped) tiling.
    out3b = jax.block_until_ready(focal_loss(logits2, target2, gamma=2.0, alpha=alpha))
    assert jnp.allclose(out3b, ref3, rtol=1e-5, atol=1e-5), (out3b, ref3)

    # bf16 logits path (no wrapper-side upcast; kernel casts per-tile in VMEM).
    logits_bf16 = logits.astype(jnp.bfloat16)
    out4 = jax.block_until_ready(
        focal_loss(logits_bf16, target, gamma=2.0, alpha=alpha)
    )
    ref4 = _focal_loss_ref(logits_bf16, target, gamma=2.0, alpha=alpha)
    assert jnp.allclose(out4, ref4, rtol=1e-5, atol=1e-5), (out4, ref4)

    # Non-integer gamma exercises the clamped jnp.power path.
    out5 = jax.block_until_ready(focal_loss(logits, target, gamma=1.5, alpha=alpha))
    ref5 = _focal_loss_ref(logits, target, gamma=1.5, alpha=alpha)
    assert jnp.allclose(out5, ref5, rtol=1e-5, atol=1e-5), (out5, ref5)

    print("KERNEL_OK")
</pallas_src>

<mosaic_0001>
module attributes {stable_mosaic.version = 11 : i64} {
  func.func @_focal_loss_kernel(%arg0: i32, %arg1: memref<8x16xf32, #tpu.memory_space<vmem>>, %arg2: memref<8x1xi32, #tpu.memory_space<vmem>>, %arg3: memref<8x1xf32, #tpu.memory_space<vmem>>, %arg4: memref<1x8x128xf32, #tpu.memory_space<vmem>>) attributes {dimension_semantics = [#tpu.dimension_semantics<parallel>], iteration_bounds = array<i64: 1>, scalar_prefetch = 0 : i64, scratch_operands = 0 : i64, tpu.core_type = #tpu.core_type<tc>, window_params = [{transform_indices = @transform_0, window_bounds = array<i64: 8, 16>}, {transform_indices = @transform_1, window_bounds = array<i64: 8, 1>}, {transform_indices = @transform_2, window_bounds = array<i64: 8, 1>}, {transform_indices = @transform_3, window_bounds = array<i64: 1, 8, 128>}]} {
    %c0 = arith.constant 0 : index
    %c0_0 = arith.constant 0 : index
    %0 = vector.load %arg1[%c0, %c0_0] : memref<8x16xf32, #tpu.memory_space<vmem>>, vector<8x16xf32>
    %c0_1 = arith.constant 0 : index
    %c0_2 = arith.constant 0 : index
    %1 = vector.load %arg2[%c0_1, %c0_2] : memref<8x1xi32, #tpu.memory_space<vmem>>, vector<8x1xi32>
    %2 = tpu.iota {dimensions = array<i32: 1>} : vector<8x16xi32>
    %3 = vector.broadcast %1 : vector<8x1xi32> to vector<8x16xi32>
    %4 = arith.cmpi eq, %2, %3 : vector<8x16xi32>
    %cst = arith.constant dense<0xFF800000> : vector<8xf32>
    %5 = vector.multi_reduction <maximumf>, %0, %cst [1] : vector<8x16xf32> to vector<8xf32>
    %6 = vector.shape_cast %5 : vector<8xf32> to vector<8x1xf32>
    %7 = vector.broadcast %6 : vector<8x1xf32> to vector<8x16xf32>
    %8 = arith.subf %0, %7 : vector<8x16xf32>
    %9 = math.exp %8 : vector<8x16xf32>
    %cst_3 = arith.constant dense<0.000000e+00> : vector<8xf32>
    %10 = vector.multi_reduction <add>, %9, %cst_3 [1] : vector<8x16xf32> to vector<8xf32>
    %11 = vector.shape_cast %10 : vector<8xf32> to vector<8x1xf32>
    %12 = math.log %11 : vector<8x1xf32>
    %13 = arith.addf %6, %12 : vector<8x1xf32>
    %cst_4 = arith.constant 0.000000e+00 : f32
    %14 = vector.broadcast %cst_4 : f32 to vector<8x16xf32>
    %15 = arith.select %4, %0, %14 : vector<8x16xi1>, vector<8x16xf32>
    %cst_5 = arith.constant dense<0.000000e+00> : vector<8xf32>
    %16 = vector.multi_reduction <add>, %15, %cst_5 [1] : vector<8x16xf32> to vector<8xf32>
    %17 = vector.shape_cast %16 : vector<8xf32> to vector<8x1xf32>
    %18 = arith.subf %13, %17 : vector<8x1xf32>
    %cst_6 = arith.constant 0.000000e+00 : f32
    %19 = vector.broadcast %cst_6 : f32 to vector<8x1xf32>
    %20 = arith.subf %19, %18 : vector<8x1xf32>
    %21 = math.exp %20 : vector<8x1xf32>
    %c0_7 = arith.constant 0 : index
    %c0_8 = arith.constant 0 : index
    %22 = vector.load %arg3[%c0_7, %c0_8] : memref<8x1xf32, #tpu.memory_space<vmem>>, vector<8x1xf32>
    %23 = arith.mulf %22, %18 : vector<8x1xf32>
    %cst_9 = arith.constant 1.000000e+00 : f32
    %24 = vector.broadcast %cst_9 : f32 to vector<8x1xf32>
    %25 = arith.subf %24, %21 : vector<8x1xf32>
    %cst_10 = arith.constant 0.000000e+00 : f32
    %26 = vector.broadcast %cst_10 : f32 to vector<8x1xf32>
    %27 = arith.maximumf %25, %26 : vector<8x1xf32>
    %28 = arith.mulf %27, %27 : vector<8x1xf32>
    %29 = arith.mulf %28, %23 : vector<8x1xf32>
    %c8_i32 = arith.constant 8 : i32
    %30 = arith.muli %arg0, %c8_i32 : i32
    %31 = tpu.iota {dimensions = array<i32: 0>} : vector<8x1xi32>
    %32 = vector.broadcast %30 : i32 to vector<8x1xi32>
    %33 = arith.addi %32, %31 : vector<8x1xi32>
    %c8_i32_11 = arith.constant 8 : i32
    %34 = vector.broadcast %c8_i32_11 : i32 to vector<8x1xi32>
    %35 = arith.cmpi slt, %33, %34 : vector<8x1xi32>
    %cst_12 = arith.constant 0.000000e+00 : f32
    %36 = vector.broadcast %cst_12 : f32 to vector<8x1xf32>
    %37 = arith.select %35, %29, %36 : vector<8x1xi1>, vector<8x1xf32>
    %38 = vector.shape_cast %37 : vector<8x1xf32> to vector<1x8x1xf32>
    %cst_13 = arith.constant dense<0.000000e+00> : vector<1xf32>
    %39 = vector.multi_reduction <add>, %38, %cst_13 [1, 2] : vector<1x8x1xf32> to vector<1xf32>
    %40 = vector.shape_cast %39 : vector<1xf32> to vector<1x1x1xf32>
    %41 = vector.extract %40[0, 0, 0] : f32 from vector<1x1x1xf32>
    %42 = vector.broadcast %41 : f32 to vector<1x8x128xf32>
    %c0_14 = arith.constant 0 : index
    %c0_15 = arith.constant 0 : index
    %c0_16 = arith.constant 0 : index
    %43 = vector.load %arg4[%c0_14, %c0_15, %c0_16] : memref<1x8x128xf32, #tpu.memory_space<vmem>>, vector<1x8x128xf32>
    tpu.vector_store %arg4[%c0_14, %c0_15, %c0_16], %42 {strides = array<i32>} : memref<1x8x128xf32, #tpu.memory_space<vmem>>, vector<1x8x128xf32>,
    return
  }
  func.func @transform_0(%arg0: i32) -> (i32, i32) {
    %c0_i32 = arith.constant 0 : i32
    %c0_i32_0 = arith.constant 0 : i32
    return %arg0, %c0_i32 : i32, i32
  }
  func.func @transform_1(%arg0: i32) -> (i32, i32) {
    %c0_i32 = arith.constant 0 : i32
    %c0_i32_0 = arith.constant 0 : i32
    return %arg0, %c0_i32 : i32, i32
  }
  func.func @transform_2(%arg0: i32) -> (i32, i32) {
    %c0_i32 = arith.constant 0 : i32
    %c0_i32_0 = arith.constant 0 : i32
    return %arg0, %c0_i32 : i32, i32
  }
  func.func @transform_3(%arg0: i32) -> (i32, i32, i32) {
    %c0_i32 = arith.constant 0 : i32
    %c0_i32_0 = arith.constant 0 : i32
    %c0_i32_1 = arith.constant 0 : i32
    return %arg0, %c0_i32, %c0_i32_0 : i32, i32, i32
  }
}

</mosaic_0001>

<bundles_post_ra>
// kernel: tpu_custom_call.1
= control target key start
LH: loop header
LB: loop body
LE: loop exit
PB: predicated region body
PF: predicated region fallthrough
CT: control target
= control target key end

     0   :  { %vm23_vm0 = vcmask 130048   ;;  %s160_s0 = inlined_call_operand.vmem [shape: f32[8,16], index: 0, kind: input, shape index: {}]   ;;  %s161_s1 = inlined_call_operand.vmem [shape: s32[8,1], index: 1, kind: input, shape index: {}]   ;;  %s162_s2 = inlined_call_operand.vmem [shape: f32[8,1], index: 2, kind: input, shape index: {}]   ;;  %s163_s3 = inlined_call_operand.hbm [shape: f32[1,8,128], index: 3, kind: output, shape index: {}]  }
   0x1   :  { %v15_v0 = vld [vmem:[%s160_s0] sm:$0xff] }
   0x2   :  { %8 = vsyncpa [#allocation3], 0  ;;  %v24_v1 = vsel %vm23_vm0, %v15_v0, -inf  ;;  %v123_v2 = vmov 0   ;;  %v16_v3 = vld [vmem:[%s161_s1] sm:$0xff]  ;;  %v17_v9 = vlaneseq  ;;  %vm57_vm2 = vcmask 7168  }
   0x3   :  { %90 = vset.pattern.permute.xlu0 %v123_v2  ;;  %v44_v24 = vld [vmem:[%s162_s2] sm:$0xff]  ;;  %s124_s16 = smov [#allocation2]   ;;  %s77_s2 = sshll.u32 %s163_s3, 4  ;;  %s78_s2 = int_to_ptr.hbm [resolvable:$true] %s77_s2 }
   0x4   :  { %25 = vmax.xlane.f32.xlu0 %v24_v1  ;;  %v18_v10 = vand.u32 127, %v17_v9  ;;  %s75_s17 = sshll.u32 %s124_s16, 4  ;;  %s76_s17 = int_to_ptr.vmem [resolvable:$true] %s75_s17 }
  0x18   :  { %20 = vperm.xlu0 %90, %v16_v3  }
  0x77   :  { %v26_v4 = vpop.xlane.xlu0 %25 }
  0x78   :  { %v27_v5 = vsub.f32 %v15_v0, %v26_v4 }
  0x7a   :  { %v28_v6 = vmul.f32 1.442695, %v27_v5 }
  0x7c   :  { %91 = vpow2.f32 %v28_v6 }
  0x82   :  { %v92_v7 = vpop.eup %91 }
  0x83   :  { %v30_v8 = vsel %vm23_vm0, %v92_v7, 0.0 }
  0x84   :  { %31 = vadd.xlane.f32.xlu1 %v30_v8 }
  0x8a   :  { %v21_v11 = vpop.permute.xlu0 %20 }
  0x8b   :  { %vm22_vm1 = vcmp.eq.s32.totalorder %v18_v10, %v21_v11 }
  0x8c   :  { %v36_v12 = vsel %vm22_vm1, %v15_v0, 0.0 }
  0x8d   :  { %v37_v13 = vsel %vm23_vm0, %v36_v12, 0.0 }
  0x8e   :  { %38 = vadd.xlane.f32.xlu1 %v37_v13 }
  0xf7   :  { %v32_v14 = vpop.xlane.xlu1 %31 }
  0xf8   :  { %93 = vlog2.f32 %v32_v14 }
  0xfe   :  { %v94_v15 = vpop.eup %93 }
  0xff   :  { %v34_v16 = vmul.f32 0.6931472, %v94_v15 }
 0x101   :  { %v35_v17 = vadd.f32 %v34_v16, %v26_v4  ;;  %v39_v18 = vpop.xlane.xlu1 %38 }
 0x103   :  { %v40_v19 = vsub.f32 %v35_v17, %v39_v18 }
 0x105   :  { %v41_v20 = vsub.f32 0.0, %v40_v19  ;;  %v45_v26 = vmul.f32 %v44_v24, %v40_v19 }
 0x107   :  { %v42_v21 = vmul.f32 1.442695, %v41_v20 }
 0x109   :  { %95 = vpow2.f32 %v42_v21 }
 0x10f   :  { %v96_v22 = vpop.eup %95 }
 0x110   :  { %v46_v23 = vsub.f32 1.0, %v96_v22 }
 0x112   :  { %v47_v25 = vmax.f32 %v46_v23, 0.0 }
 0x114   :  { %v48_v27 = vmul.f32 %v47_v25, %v47_v25 }
 0x116   :  { %v49_v28 = vmul.f32 %v48_v27, %v45_v26 }
 0x118   :  { %v58_v29 = vsel %vm57_vm2, %v49_v28, 0.0 }
 0x119   :  { %59 = vadd.xlane.f32.xlu2 %v58_v29 }
 0x18c   :  { %v60_v30 = vpop.xlane.xlu2 %59 }
 0x18d   :  { %v61_v31 = vrot.slane %v60_v30, 4 }
 0x18f   :  { %v62_v32 = vadd.f32 %v61_v31, %v60_v30 }
 0x191   :  { %v63_v33 = vrot.slane %v62_v32, 2 }
 0x193   :  { %v64_v34 = vadd.f32 %v63_v33, %v62_v32 }
 0x195   :  { %v65_v35 = vrot.slane %v64_v34, 1 }
 0x197   :  { %v66_v36 = vadd.f32 %v65_v35, %v64_v34 }
 0x199   :  { %86 = vpush %v66_v36 }
 0x1ca   :  { %s87_s20 = spop %86 }
 0x1cb   :  { %v68_v37 = vstv %s87_s20 }
 0x1cc   :  { %69 = vst [vmem:[#allocation2] sm:$0xff] %v68_v37 }
 0x1cd   :  { %80 = dma.vmem_to_hbm [thread:$0]  %s76_s17, 128, %s78_s2, [#allocation3]  }
 0x1ce   :  { %121 = dma.done.wait [#allocation3], 128  }
 0x1cf   :  { %122 = vsyncadd [#allocation3], 4294967168 }
 0x1d0   :  { %85 = vsyncpa [#allocation3], 1 }

</bundles_post_ra>
